<compile_context>
chip_gen: v7x
topology: tpu7x:2x2x1
jax: 0.10.0
libtpu: 0.0.40
codegen_flags: <defaults>
</compile_context>

<pallas_src>
import jax
import jax.numpy as jnp
from jax.experimental import pallas as pl
from jax.experimental.pallas import tpu as pltpu  # noqa: F401  (TPU backend; kept for parity/extensions)


def _fused_mlp_kernel(*refs):
    """refs = (x_ref, w0, b0, w1, b1, ..., wL, bL, out_ref).

    All layers run back-to-back in VMEM: matmuls on the MXU (f32 accumulation),
    bias-add + ReLU on the VPU. Only the final [M, output_dim] tile is stored.
    """
    x_ref = refs[0]
    out_ref = refs[-1]
    wb_refs = refs[1:-1]
    n_layers = len(wb_refs) // 2

    h = x_ref[...]
    for i in range(n_layers):
        w_ref = wb_refs[2 * i]
        b_ref = wb_refs[2 * i + 1]          # (1, N) -> broadcasts over batch rows
        h = jnp.dot(h, w_ref[...], preferred_element_type=jnp.float32) + b_ref[...]
        if i != n_layers - 1:
            h = jnp.maximum(h, 0.0)
    out_ref[...] = h.astype(out_ref.dtype)


def fully_connected_mlp_forward(x, params, output_dim):
    """Equivalent of FullyConnectedMLP.forward: flatten, hidden Linear+ReLU, final Linear.

    x: [B, ...] (e.g. NCHW), params: list of (w [K, N], b [N]) in f32.
    Returns [B, output_dim] f32.
    """
    batch = x.shape[0]
    h = x.reshape(batch, -1).astype(jnp.float32)   # x.view(batch_size, -1)
    d_in = h.shape[1]

    # Pad the batch to a multiple of 8 sublanes so the vreg / MXU aren't mostly idle.
    m_pad = max(8, ((batch + 7) // 8) * 8)
    if m_pad != batch:
        h = jnp.pad(h, ((0, m_pad - batch), (0, 0)))

    # Build one fused pallas_call: x, then (w, b) per layer, single full-extent blocks.
    # (Full-array blocks bypass the (8,128) divisibility constraint; everything fits VMEM.)
    in_specs = [pl.BlockSpec((m_pad, d_in), lambda: (0, 0))]
    args = [h]
    flops = 0
    bytes_accessed = h.size * 4 + m_pad * output_dim * 4
    for (w, b) in params:
        k, n = w.shape
        assert b.shape == (n,)
        in_specs.append(pl.BlockSpec((k, n), lambda: (0, 0)))
        in_specs.append(pl.BlockSpec((1, n), lambda: (0, 0)))
        args.append(w)
        args.append(b.reshape(1, n))
        flops += 2 * m_pad * k * n
        bytes_accessed += (k * n + n) * 4

    out = pl.pallas_call(
        _fused_mlp_kernel,
        out_shape=jax.ShapeDtypeStruct((m_pad, output_dim), jnp.float32),
        in_specs=in_specs,
        out_specs=pl.BlockSpec((m_pad, output_dim), lambda: (0, 0)),
        cost_estimate=pl.CostEstimate(
            flops=flops, transcendentals=0, bytes_accessed=bytes_accessed),
    )(*args)

    # Drop padded rows; already [batch, output_dim] (matches .view(batch, output_dim)).
    return out[:batch]


def init_mlp_params(key, input_dim, hiddens, output_dim):
    """Deterministic init mirroring nn.Linear's default U(-1/sqrt(fan_in), 1/sqrt(fan_in))."""
    dims = [input_dim] + list(hiddens) + [output_dim]
    params = []
    for i in range(len(dims) - 1):
        fan_in, fan_out = dims[i], dims[i + 1]
        key, kw, kb = jax.random.split(key, 3)
        bound = 1.0 / jnp.sqrt(float(fan_in))
        w = jax.random.uniform(kw, (fan_in, fan_out), jnp.float32, -bound, bound)
        b = jax.random.uniform(kb, (fan_out,), jnp.float32, -bound, bound)
        params.append((w, b))
    return params


def _reference_forward(x, params):
    batch = x.shape[0]
    h = x.reshape(batch, -1)
    for i, (w, b) in enumerate(params):
        h = h @ w + b
        if i != len(params) - 1:
            h = jnp.maximum(h, 0.0)
    return h


if __name__ == "__main__":
    # Small shapes consistent with the module: image-like NCHW input flattened to input_dim.
    batch, C, H, W = 2, 4, 16, 16
    input_dim = C * H * W          # 1024
    hiddens = [32, 32]
    output_dim = 8

    key = jax.random.PRNGKey(0)
    key, kx = jax.random.split(key)
    x = jax.random.normal(kx, (batch, C, H, W), jnp.float32)

    params = init_mlp_params(key, input_dim, hiddens, output_dim)

    out = fully_connected_mlp_forward(x, params, output_dim)
    out = jax.block_until_ready(out)
    assert out.shape == (batch, output_dim)

    ref = _reference_forward(x, params)
    assert jnp.allclose(out, ref, atol=1e-4, rtol=1e-4), "mismatch vs JAX reference"

    print("KERNEL_OK")
</pallas_src>

<mosaic_0001>
module attributes {stable_mosaic.version = 11 : i64} {
  func.func @_fused_mlp_kernel(%arg0: memref<8x1024xf32, #tpu.memory_space<vmem>>, %arg1: memref<1024x32xf32, #tpu.memory_space<vmem>>, %arg2: memref<1x32xf32, #tpu.memory_space<vmem>>, %arg3: memref<32x32xf32, #tpu.memory_space<vmem>>, %arg4: memref<1x32xf32, #tpu.memory_space<vmem>>, %arg5: memref<32x8xf32, #tpu.memory_space<vmem>>, %arg6: memref<1x8xf32, #tpu.memory_space<vmem>>, %arg7: memref<8x8xf32, #tpu.memory_space<vmem>>) attributes {dimension_semantics = [], scalar_prefetch = 0 : i64, scratch_operands = 0 : i64, tpu.core_type = #tpu.core_type<tc>} {
    %c0 = arith.constant 0 : index
    %c0_0 = arith.constant 0 : index
    %0 = vector.load %arg0[%c0, %c0_0] : memref<8x1024xf32, #tpu.memory_space<vmem>>, vector<8x1024xf32>
    %c0_1 = arith.constant 0 : index
    %c0_2 = arith.constant 0 : index
    %1 = vector.load %arg1[%c0_1, %c0_2] : memref<1024x32xf32, #tpu.memory_space<vmem>>, vector<1024x32xf32>
    %cst = arith.constant dense<0.000000e+00> : vector<8x32xf32>
    %2 = tpu.matmul %0, %1, %cst {dimension_numbers = #tpu.dot_dimension_numbers<[1], [0], [0], [1], [0, 0, 1, 1], [], []>} : vector<8x1024xf32>, vector<1024x32xf32>, vector<8x32xf32> -> vector<8x32xf32>
    %c0_3 = arith.constant 0 : index
    %c0_4 = arith.constant 0 : index
    %3 = vector.load %arg2[%c0_3, %c0_4] : memref<1x32xf32, #tpu.memory_space<vmem>>, vector<1x32xf32>
    %4 = vector.broadcast %3 : vector<1x32xf32> to vector<8x32xf32>
    %5 = arith.addf %2, %4 : vector<8x32xf32>
    %cst_5 = arith.constant 0.000000e+00 : f32
    %6 = vector.broadcast %cst_5 : f32 to vector<8x32xf32>
    %7 = arith.maximumf %5, %6 : vector<8x32xf32>
    %c0_6 = arith.constant 0 : index
    %c0_7 = arith.constant 0 : index
    %8 = vector.load %arg3[%c0_6, %c0_7] : memref<32x32xf32, #tpu.memory_space<vmem>>, vector<32x32xf32>
    %cst_8 = arith.constant dense<0.000000e+00> : vector<8x32xf32>
    %9 = tpu.matmul %7, %8, %cst_8 {dimension_numbers = #tpu.dot_dimension_numbers<[1], [0], [0], [1], [0, 0, 1, 1], [], []>} : vector<8x32xf32>, vector<32x32xf32>, vector<8x32xf32> -> vector<8x32xf32>
    %c0_9 = arith.constant 0 : index
    %c0_10 = arith.constant 0 : index
    %10 = vector.load %arg4[%c0_9, %c0_10] : memref<1x32xf32, #tpu.memory_space<vmem>>, vector<1x32xf32>
    %11 = vector.broadcast %10 : vector<1x32xf32> to vector<8x32xf32>
    %12 = arith.addf %9, %11 : vector<8x32xf32>
    %cst_11 = arith.constant 0.000000e+00 : f32
    %13 = vector.broadcast %cst_11 : f32 to vector<8x32xf32>
    %14 = arith.maximumf %12, %13 : vector<8x32xf32>
    %c0_12 = arith.constant 0 : index
    %c0_13 = arith.constant 0 : index
    %15 = vector.load %arg5[%c0_12, %c0_13] : memref<32x8xf32, #tpu.memory_space<vmem>>, vector<32x8xf32>
    %cst_14 = arith.constant dense<0.000000e+00> : vector<8x8xf32>
    %16 = tpu.matmul %14, %15, %cst_14 {dimension_numbers = #tpu.dot_dimension_numbers<[1], [0], [0], [1], [0, 0, 1, 1], [], []>} : vector<8x32xf32>, vector<32x8xf32>, vector<8x8xf32> -> vector<8x8xf32>
    %c0_15 = arith.constant 0 : index
    %c0_16 = arith.constant 0 : index
    %17 = vector.load %arg6[%c0_15, %c0_16] : memref<1x8xf32, #tpu.memory_space<vmem>>, vector<1x8xf32>
    %18 = vector.broadcast %17 : vector<1x8xf32> to vector<8x8xf32>
    %19 = arith.addf %16, %18 : vector<8x8xf32>
    %c0_17 = arith.constant 0 : index
    %c0_18 = arith.constant 0 : index
    %20 = vector.load %arg7[%c0_17, %c0_18] : memref<8x8xf32, #tpu.memory_space<vmem>>, vector<8x8xf32>
    tpu.vector_store %arg7[%c0_17, %c0_18], %19 {strides = array<i32>} : memref<8x8xf32, #tpu.memory_space<vmem>>, vector<8x8xf32>,
    return
  }
}

</mosaic_0001>

<bundles_post_ra>
// kernel: tpu_custom_call.1
= control target key start
LH: loop header
LB: loop body
LE: loop exit
PB: predicated region body
PF: predicated region fallthrough
CT: control target
= control target key end

     0   :  { %s1479_s0 = inlined_call_operand.vmem [shape: f32[8,1024], index: 0, kind: input, shape index: {}]   ;;  %s1480_s1 = inlined_call_operand.vmem [shape: f32[1024,32], index: 1, kind: input, shape index: {}]   ;;  %s1481_s2 = inlined_call_operand.vmem [shape: f32[1,32], index: 2, kind: input, shape index: {}]   ;;  %s1482_s3 = inlined_call_operand.vmem [shape: f32[32,32], index: 3, kind: input, shape index: {}]   ;;  %s1483_s4 = inlined_call_operand.vmem [shape: f32[1,32], index: 4, kind: input, shape index: {}]   ;;  %s1484_s5 = inlined_call_operand.vmem [shape: f32[32,8], index: 5, kind: input, shape index: {}]   ;;  %s1485_s6 = inlined_call_operand.vmem [shape: f32[1,8], index: 6, kind: input, shape index: {}]   ;;  %s1486_s7 = inlined_call_operand.hbm [shape: f32[8,8], index: 7, kind: output, shape index: {}]  }
   0x1   :  { %v51_v0 = vld [vmem:[%s1480_s1 + $0x80] sm:$0xff]  ;;  %v52_v1 = vld [vmem:[%s1480_s1 + $0x88] sm:$0xff]  ;;  %v53_v11 = vld [vmem:[%s1480_s1 + $0x90] sm:$0xff] }
   0x2   :  { %v35_v2 = vld [vmem:[%s1480_s1] sm:$0xff]  ;;  %v814_v3 = vpack.c.bf16 %v52_v1, %v51_v0  ;;  %v36_v4 = vld [vmem:[%s1480_s1 + $0x8] sm:$0xff]  ;;  %v54_v13 = vld [vmem:[%s1480_s1 + $0x98] sm:$0xff] }
   0x3   :  { %v83_v5 = vld [vmem:[%s1480_s1 + $0x180] sm:$0xff]  ;;  %v84_v6 = vld [vmem:[%s1480_s1 + $0x188] sm:$0xff]  ;;  %v816_v7 = vpack.c.bf16 %v36_v4, %v35_v2  ;;  %v37_v14 = vld [vmem:[%s1480_s1 + $0x10] sm:$0xff]  ;;  %v818_v16 = vpack.c.bf16 %v54_v13, %v53_v11 }
   0x4   :  { %v846_v8 = vpack.c.bf16 %v84_v6, %v83_v5  ;;  %v67_v9 = vld [vmem:[%s1480_s1 + $0x100] sm:$0xff]  ;;  %v68_v10 = vld [vmem:[%s1480_s1 + $0x108] sm:$0xff]  ;;  %815 = vmatprep.subr.bf16.mxu0 %v814_v3  ;;  %v38_v15 = vld [vmem:[%s1480_s1 + $0x18] sm:$0xff] }
   0x5   :  { %v848_v12 = vpack.c.bf16 %v68_v10, %v67_v9  ;;  %817 = vmatpush3.bf16.msra.mxu0 %v816_v7  ;;  %v820_v17 = vpack.c.bf16 %v38_v15, %v37_v14  ;;  %v85_v18 = vld [vmem:[%s1480_s1 + $0x190] sm:$0xff]  ;;  %v86_v19 = vld [vmem:[%s1480_s1 + $0x198] sm:$0xff]  ;;  %v55_v23 = vld [vmem:[%s1480_s1 + $0xa0] sm:$0xff] }
   0x6   :  { %847 = vmatprep.subr.bf16.mxu1 %v846_v8  ;;  %v69_v20 = vld [vmem:[%s1480_s1 + $0x110] sm:$0xff]  ;;  %v850_v21 = vpack.c.bf16 %v86_v19, %v85_v18  ;;  %v70_v22 = vld [vmem:[%s1480_s1 + $0x118] sm:$0xff]  ;;  %v56_v24 = vld [vmem:[%s1480_s1 + $0xa8] sm:$0xff]  ;;  %819 = vmatprep.subr.bf16.mxu0 %v818_v16 }
   0x7   :  { %849 = vmatpush3.bf16.msra.mxu1 %v848_v12  ;;  %v852_v25 = vpack.c.bf16 %v70_v22, %v69_v20  ;;  %v822_v26 = vpack.c.bf16 %v56_v24, %v55_v23  ;;  %v39_v27 = vld [vmem:[%s1480_s1 + $0x20] sm:$0xff]  ;;  %v40_v28 = vld [vmem:[%s1480_s1 + $0x28] sm:$0xff]  ;;  %v57_v35 = vld [vmem:[%s1480_s1 + $0xb0] sm:$0xff] }
   0x8   :  { %v87_v29 = vld [vmem:[%s1480_s1 + $0x1a0] sm:$0xff]  ;;  %851 = vmatprep.subr.bf16.mxu1 %v850_v21  ;;  %v88_v30 = vld [vmem:[%s1480_s1 + $0x1a8] sm:$0xff]  ;;  %v824_v33 = vpack.c.bf16 %v40_v28, %v39_v27  ;;  %v58_v36 = vld [vmem:[%s1480_s1 + $0xb8] sm:$0xff] }
   0x9   :  { %v71_v31 = vld [vmem:[%s1480_s1 + $0x120] sm:$0xff]  ;;  %v72_v32 = vld [vmem:[%s1480_s1 + $0x128] sm:$0xff]  ;;  %821 = vmatpush3.bf16.msra.mxu0 %v820_v17  ;;  %v854_v34 = vpack.c.bf16 %v88_v30, %v87_v29  ;;  %v41_v37 = vld [vmem:[%s1480_s1 + $0x30] sm:$0xff]  ;;  %v826_v39 = vpack.c.bf16 %v58_v36, %v57_v35 }
   0xa   :  { %823 = vmatprep.subr.bf16.mxu0 %v822_v26  ;;  %v856_v38 = vpack.c.bf16 %v72_v32, %v71_v31  ;;  %v42_v40 = vld [vmem:[%s1480_s1 + $0x38] sm:$0xff]  ;;  %v89_v41 = vld [vmem:[%s1480_s1 + $0x1b0] sm:$0xff]  ;;  %v59_v46 = vld [vmem:[%s1480_s1 + $0xc0] sm:$0xff] }
   0xb   :  { %853 = vmatpush3.bf16.msra.mxu1 %v852_v25  ;;  %v90_v42 = vld [vmem:[%s1480_s1 + $0x1b8] sm:$0xff]  ;;  %v73_v44 = vld [vmem:[%s1480_s1 + $0x130] sm:$0xff]  ;;  %v60_v47 = vld [vmem:[%s1480_s1 + $0xc8] sm:$0xff]  ;;  %v828_v48 = vpack.c.bf16 %v42_v40, %v41_v37 }
   0xc   :  { %855 = vmatprep.subr.bf16.mxu1 %v854_v34  ;;  %v858_v43 = vpack.c.bf16 %v90_v42, %v89_v41  ;;  %v74_v45 = vld [vmem:[%s1480_s1 + $0x138] sm:$0xff]  ;;  %v91_v49 = vld [vmem:[%s1480_s1 + $0x1c0] sm:$0xff]  ;;  %v92_v50 = vld [vmem:[%s1480_s1 + $0x1c8] sm:$0xff]  ;;  %v830_v52 = vpack.c.bf16 %v60_v47, %v59_v46 }
   0xd   :  { %825 = vmatpush3.bf16.msra.mxu0 %v824_v33  ;;  %v860_v51 = vpack.c.bf16 %v74_v45, %v73_v44  ;;  %v43_v53 = vld [vmem:[%s1480_s1 + $0x40] sm:$0xff]  ;;  %v44_v54 = vld [vmem:[%s1480_s1 + $0x48] sm:$0xff]  ;;  %v862_v56 = vpack.c.bf16 %v92_v50, %v91_v49  ;;  %v61_v58 = vld [vmem:[%s1480_s1 + $0xd0] sm:$0xff] }
   0xe   :  { %827 = vmatprep.subr.bf16.mxu0 %v826_v39  ;;  %v75_v55 = vld [vmem:[%s1480_s1 + $0x140] sm:$0xff]  ;;  %v76_v57 = vld [vmem:[%s1480_s1 + $0x148] sm:$0xff]  ;;  %v62_v59 = vld [vmem:[%s1480_s1 + $0xd8] sm:$0xff]  ;;  %v832_v62 = vpack.c.bf16 %v44_v54, %v43_v53 }
   0xf   :  { %857 = vmatpush3.bf16.msra.mxu1 %v856_v38  ;;  %v93_v60 = vld [vmem:[%s1480_s1 + $0x1d0] sm:$0xff]  ;;  %v94_v61 = vld [vmem:[%s1480_s1 + $0x1d8] sm:$0xff]  ;;  %v864_v63 = vpack.c.bf16 %v76_v57, %v75_v55  ;;  %v834_v0 = vpack.c.bf16 %v62_v59, %v61_v58  ;;  %v63_v6 = vld [vmem:[%s1480_s1 + $0xe0] sm:$0xff] }
  0x10   :  { %859 = vmatprep.subr.bf16.mxu1 %v858_v43  ;;  %v45_v1 = vld [vmem:[%s1480_s1 + $0x50] sm:$0xff]  ;;  %v46_v2 = vld [vmem:[%s1480_s1 + $0x58] sm:$0xff]  ;;  %v866_v4 = vpack.c.bf16 %v94_v61, %v93_v60  ;;  %v64_v7 = vld [vmem:[%s1480_s1 + $0xe8] sm:$0xff] }
  0x11   :  { %829 = vmatpush3.bf16.msra.mxu0 %v828_v48  ;;  %v77_v3 = vld [vmem:[%s1480_s1 + $0x150] sm:$0xff]  ;;  %v78_v5 = vld [vmem:[%s1480_s1 + $0x158] sm:$0xff]  ;;  %v95_v8 = vld [vmem:[%s1480_s1 + $0x1e0] sm:$0xff]  ;;  %v836_v10 = vpack.c.bf16 %v46_v2, %v45_v1  ;;  %v838_v14 = vpack.c.bf16 %v64_v7, %v63_v6 }
  0x12   :  { %831 = vmatprep.subr.bf16.mxu0 %v830_v52  ;;  %v96_v9 = vld [vmem:[%s1480_s1 + $0x1e8] sm:$0xff]  ;;  %v47_v11 = vld [vmem:[%s1480_s1 + $0x60] sm:$0xff]  ;;  %v868_v13 = vpack.c.bf16 %v78_v5, %v77_v3  ;;  %v65_v19 = vld [vmem:[%s1480_s1 + $0xf0] sm:$0xff] }
  0x13   :  { %861 = vmatpush3.bf16.msra.mxu1 %v860_v51  ;;  %v48_v12 = vld [vmem:[%s1480_s1 + $0x68] sm:$0xff]  ;;  %v79_v15 = vld [vmem:[%s1480_s1 + $0x160] sm:$0xff]  ;;  %v870_v18 = vpack.c.bf16 %v96_v9, %v95_v8  ;;  %v66_v20 = vld [vmem:[%s1480_s1 + $0xf8] sm:$0xff] }
  0x14   :  { %863 = vmatprep.subr.bf16.mxu1 %v862_v56  ;;  %v80_v16 = vld [vmem:[%s1480_s1 + $0x168] sm:$0xff]  ;;  %v30_v21 = vld [vmem:[%s1479_s0 + $0x18] sm:$0xff]  ;;  %v97_v22 = vld [vmem:[%s1480_s1 + $0x1f0] sm:$0xff]  ;;  %v840_v24 = vpack.c.bf16 %v48_v12, %v47_v11  ;;  %v842_v26 = vpack.c.bf16 %v66_v20, %v65_v19 }
  0x15   :  { %833 = vmatpush3.bf16.msra.mxu0 %v832_v62  ;;  %v28_v17 = vld [vmem:[%s1479_s0 + $0x8] sm:$0xff]  ;;  %v98_v23 = vld [vmem:[%s1480_s1 + $0x1f8] sm:$0xff]  ;;  %304 = vmatprep.mubr.f32.mxu1 %v30_v21  ;;  %v872_v25 = vpack.c.bf16 %v80_v16, %v79_v15  ;;  %v49_v27 = vld [vmem:[%s1480_s1 + $0x70] sm:$0xff] }
  0x16   :  { %835 = vmatprep.subr.bf16.mxu0 %v834_v0  ;;  %234 = vmatprep.mubr.f32.mxu0 %v28_v17  ;;  %v50_v28 = vld [vmem:[%s1480_s1 + $0x78] sm:$0xff]  ;;  %v81_v29 = vld [vmem:[%s1480_s1 + $0x170] sm:$0xff]  ;;  %v874_v30 = vpack.c.bf16 %v98_v23, %v97_v22  ;;  %v115_v32 = vld [vmem:[%s1480_s1 + $0x280] sm:$0xff] }
  0x17   :  { %865 = vmatpush3.bf16.msra.mxu1 %v864_v63  ;;  %v82_v31 = vld [vmem:[%s1480_s1 + $0x178] sm:$0xff]  ;;  %v116_v33 = vld [vmem:[%s1480_s1 + $0x288] sm:$0xff]  ;;  %v147_v34 = vld [vmem:[%s1480_s1 + $0x380] sm:$0xff]  ;;  %v844_v36 = vpack.c.bf16 %v50_v28, %v49_v27 }
  0x18   :  { %867 = vmatprep.subr.bf16.mxu1 %v866_v4  ;;  %v148_v35 = vld [vmem:[%s1480_s1 + $0x388] sm:$0xff]  ;;  %v876_v37 = vpack.c.bf16 %v82_v31, %v81_v29  ;;  %v878_v38 = vpack.c.bf16 %v116_v33, %v115_v32  ;;  %v99_v39 = vld [vmem:[%s1480_s1 + $0x200] sm:$0xff]  ;;  %v117_v44 = vld [vmem:[%s1480_s1 + $0x290] sm:$0xff] }
  0x19   :  { %837 = vmatpush3.bf16.msra.mxu0 %v836_v10  ;;  %v100_v40 = vld [vmem:[%s1480_s1 + $0x208] sm:$0xff]  ;;  %v131_v41 = vld [vmem:[%s1480_s1 + $0x300] sm:$0xff]  ;;  %v910_v42 = vpack.c.bf16 %v148_v35, %v147_v34  ;;  %v118_v45 = vld [vmem:[%s1480_s1 + $0x298] sm:$0xff] }
  0x1a   :  { %839 = vmatprep.subr.bf16.mxu0 %v838_v14  ;;  %v132_v43 = vld [vmem:[%s1480_s1 + $0x308] sm:$0xff]  ;;  %v149_v46 = vld [vmem:[%s1480_s1 + $0x390] sm:$0xff]  ;;  %v150_v47 = vld [vmem:[%s1480_s1 + $0x398] sm:$0xff]  ;;  %v880_v49 = vpack.c.bf16 %v100_v40, %v99_v39  ;;  %v882_v52 = vpack.c.bf16 %v118_v45, %v117_v44 }
  0x1b   :  { %869 = vmatpush3.bf16.msra.mxu1 %v868_v13  ;;  %v27_v48 = vld [vmem:[%s1479_s0] sm:$0xff]  ;;  %v29_v50 = vld [vmem:[%s1479_s0 + $0x10] sm:$0xff]  ;;  %v912_v51 = vpack.c.bf16 %v132_v43, %v131_v41  ;;  %v102_v54 = vld [vmem:[%s1480_s1 + $0x218] sm:$0xff]  ;;  %v914_v56 = vpack.c.bf16 %v150_v47, %v149_v46 }
  0x1c   :  { %871 = vmatprep.subr.bf16.mxu1 %v870_v18  ;;  %v101_v53 = vld [vmem:[%s1480_s1 + $0x210] sm:$0xff]  ;;  %v134_v57 = vld [vmem:[%s1480_s1 + $0x318] sm:$0xff]  ;;  %v119_v58 = vld [vmem:[%s1480_s1 + $0x2a0] sm:$0xff] }
  0x1d   :  { %841 = vmatpush3.bf16.msra.mxu0 %v840_v24  ;;  %v133_v55 = vld [vmem:[%s1480_s1 + $0x310] sm:$0xff]  ;;  %v120_v59 = vld [vmem:[%s1480_s1 + $0x2a8] sm:$0xff]  ;;  %v151_v60 = vld [vmem:[%s1480_s1 + $0x3a0] sm:$0xff]  ;;  %v884_v62 = vpack.c.bf16 %v102_v54, %v101_v53 }
  0x1e   :  { %843 = vmatprep.subr.bf16.mxu0 %v842_v26  ;;  %v152_v61 = vld [vmem:[%s1480_s1 + $0x3a8] sm:$0xff]  ;;  %v916_v63 = vpack.c.bf16 %v134_v57, %v133_v55  ;;  %v886_v0 = vpack.c.bf16 %v120_v59, %v119_v58  ;;  %v103_v1 = vld [vmem:[%s1480_s1 + $0x220] sm:$0xff]  ;;  %v121_v6 = vld [vmem:[%s1480_s1 + $0x2b0] sm:$0xff] }
  0x1f   :  { %873 = vmatpush3.bf16.msra.mxu1 %v872_v25  ;;  %v104_v2 = vld [vmem:[%s1480_s1 + $0x228] sm:$0xff]  ;;  %v135_v3 = vld [vmem:[%s1480_s1 + $0x320] sm:$0xff]  ;;  %v918_v4 = vpack.c.bf16 %v152_v61, %v151_v60  ;;  %v122_v7 = vld [vmem:[%s1480_s1 + $0x2b8] sm:$0xff] }
  0x20   :  { %875 = vmatprep.subr.bf16.mxu1 %v874_v30  ;;  %v136_v5 = vld [vmem:[%s1480_s1 + $0x328] sm:$0xff]  ;;  %v153_v8 = vld [vmem:[%s1480_s1 + $0x3b0] sm:$0xff]  ;;  %v154_v9 = vld [vmem:[%s1480_s1 + $0x3b8] sm:$0xff]  ;;  %v888_v10 = vpack.c.bf16 %v104_v2, %v103_v1  ;;  %v890_v12 = vpack.c.bf16 %v122_v7, %v121_v6 }
  0x21   :  { %845 = vmatpush3.bf16.msra.mxu0 %v844_v36  ;;  %v920_v11 = vpack.c.bf16 %v136_v5, %v135_v3  ;;  %v105_v13 = vld [vmem:[%s1480_s1 + $0x230] sm:$0xff]  ;;  %v106_v14 = vld [vmem:[%s1480_s1 + $0x238] sm:$0xff]  ;;  %v922_v16 = vpack.c.bf16 %v154_v9, %v153_v8  ;;  %v123_v18 = vld [vmem:[%s1480_s1 + $0x2c0] sm:$0xff] }
  0x22   :  { %879 = vmatprep.subr.bf16.mxu0 %v878_v38  ;;  %v137_v15 = vld [vmem:[%s1480_s1 + $0x330] sm:$0xff]  ;;  %v138_v17 = vld [vmem:[%s1480_s1 + $0x338] sm:$0xff]  ;;  %v124_v19 = vld [vmem:[%s1480_s1 + $0x2c8] sm:$0xff]  ;;  %v892_v22 = vpack.c.bf16 %v106_v14, %v105_v13 }
  0x23   :  { %877 = vmatpush3.bf16.msra.mxu1 %v876_v37  ;;  %v155_v20 = vld [vmem:[%s1480_s1 + $0x3c0] sm:$0xff]  ;;  %v156_v21 = vld [vmem:[%s1480_s1 + $0x3c8] sm:$0xff]  ;;  %v34_v25 = vld [vmem:[%s1479_s0 + $0x38] sm:$0xff]  ;;  %v924_v26 = vpack.c.bf16 %v138_v17, %v137_v15  ;;  %v894_v27 = vpack.c.bf16 %v124_v19, %v123_v18 }
  0x24   :  { %911 = vmatprep.subr.bf16.mxu1 %v910_v42  ;;  %235 = vmatmul.mubr.f32.vlgmr.msra.gmra.mrb[0].mxu0 %v27_v48  ;;  %v107_v23 = vld [vmem:[%s1480_s1 + $0x240] sm:$0xff]  ;;  %v32_v24 = vld [vmem:[%s1479_s0 + $0x28] sm:$0xff] }
  0x25   :  { %881 = vmatpush3.bf16.msra.mxu0 %v880_v49  ;;  %v108_v28 = vld [vmem:[%s1480_s1 + $0x248] sm:$0xff]  ;;  %v139_v29 = vld [vmem:[%s1480_s1 + $0x340] sm:$0xff] }
  0x26   :  { %305 = vmatmul.mubr.f32.vlgmr.msra.gmra.mrb[0].mxu1 %v29_v50  ;;  %883 = vmatprep.subr.bf16.mxu0 %v882_v52 }
  0x27   :  { %913 = vmatpush3.bf16.msra.mxu1 %v912_v51 }
  0x28   :  { %915 = vmatprep.subr.bf16.mxu1 %v914_v56 }
  0x29   :  { %885 = vmatpush3.bf16.msra.mxu0 %v884_v62 }
  0x2a   :  { %887 = vmatprep.subr.bf16.mxu0 %v886_v0 }
  0x2b   :  { %917 = vmatpush3.bf16.msra.mxu1 %v916_v63 }
  0x2c   :  { %919 = vmatprep.subr.bf16.mxu1 %v918_v4 }
  0x2d   :  { %889 = vmatpush3.bf16.msra.mxu0 %v888_v10 }
  0x2e   :  { %891 = vmatprep.subr.bf16.mxu0 %v890_v12 }
  0x2f   :  { %921 = vmatpush3.bf16.msra.mxu1 %v920_v11 }
  0x30   :  { %12 = vsyncpa [#allocation3], 0  ;;  %923 = vmatprep.subr.bf16.mxu1 %v922_v16  ;;  %v926_v30 = vpack.c.bf16 %v156_v21, %v155_v20  ;;  %v140_v31 = vld [vmem:[%s1480_s1 + $0x348] sm:$0xff]  ;;  %v125_v32 = vld [vmem:[%s1480_s1 + $0x2d0] sm:$0xff]  ;;  %374 = vmatprep.mubr.f32.mxu0 %v32_v24  ;;  %v896_v36 = vpack.c.bf16 %v108_v28, %v107_v23  ;;  %v982_v11 = vmov 0.0|0.0   ;;  %vm983_vm0 = vmmov 0  }
  0x31   :  { %v126_v33 = vld [vmem:[%s1480_s1 + $0x2d8] sm:$0xff]  ;;  %v157_v34 = vld [vmem:[%s1480_s1 + $0x3d0] sm:$0xff]  ;;  %444 = vmatprep.mubr.f32.mxu1 %v34_v25  ;;  %893 = vmatpush3.bf16.msra.mxu0 %v892_v22  ;;  %v928_v37 = vpack.c.bf16 %v140_v31, %v139_v29  ;;  %v127_v44 = vld [vmem:[%s1480_s1 + $0x2e0] sm:$0xff]  ;;  %v984_v15 = vmov 0.0   ;;  %vm462_vm1 = vcmask 261120   ;;  %s985_s15 = smov [#allocation2]  }
  0x32   :  { %v158_v35 = vld [vmem:[%s1480_s1 + $0x3d8] sm:$0xff]  ;;  %895 = vmatprep.subr.bf16.mxu0 %v894_v27  ;;  %v898_v38 = vpack.c.bf16 %v126_v33, %v125_v32  ;;  %v109_v39 = vld [vmem:[%s1480_s1 + $0x250] sm:$0xff]  ;;  %v128_v45 = vld [vmem:[%s1480_s1 + $0x2e8] sm:$0xff]  ;;  %s629_s16 = sshll.u32 %s985_s15, 4  ;;  %vm621_vm2 = vcmask 64512   ;;  %s630_s16 = int_to_ptr.vmem [resolvable:$true] %s629_s16 }
  0x33   :  { %925 = vmatpush3.bf16.msra.mxu1 %v924_v26  ;;  %v110_v40 = vld [vmem:[%s1480_s1 + $0x258] sm:$0xff]  ;;  %v141_v41 = vld [vmem:[%s1480_s1 + $0x350] sm:$0xff]  ;;  %v930_v42 = vpack.c.bf16 %v158_v35, %v157_v34  ;;  %v159_v46 = vld [vmem:[%s1480_s1 + $0x3e0] sm:$0xff]  ;;  %v902_v50 = vpack.c.bf16 %v128_v45, %v127_v44  ;;  %p963_p1 = scmp.lt.s32.totalorder %s630_s16, %s630_s16 }
  0x34   :  { %927 = vmatprep.subr.bf16.mxu1 %v926_v30  ;;  %v142_v43 = vld [vmem:[%s1480_s1 + $0x358] sm:$0xff]  ;;  %v160_v47 = vld [vmem:[%s1480_s1 + $0x3e8] sm:$0xff]  ;;  %v900_v48 = vpack.c.bf16 %v110_v40, %v109_v39  ;;  %v111_v51 = vld [vmem:[%s1480_s1 + $0x260] sm:$0xff] }
  0x35   :  { %897 = vmatpush3.bf16.msra.mxu0 %v896_v36  ;;  %v932_v49 = vpack.c.bf16 %v142_v43, %v141_v41  ;;  %v112_v52 = vld [vmem:[%s1480_s1 + $0x268] sm:$0xff]  ;;  %v143_v53 = vld [vmem:[%s1480_s1 + $0x360] sm:$0xff]  ;;  %v934_v54 = vpack.c.bf16 %v160_v47, %v159_v46  ;;  %v129_v56 = vld [vmem:[%s1480_s1 + $0x2f0] sm:$0xff] }
  0x36   :  { %899 = vmatprep.subr.bf16.mxu0 %v898_v38  ;;  %v144_v55 = vld [vmem:[%s1480_s1 + $0x368] sm:$0xff]  ;;  %v130_v57 = vld [vmem:[%s1480_s1 + $0x2f8] sm:$0xff]  ;;  %v161_v58 = vld [vmem:[%s1480_s1 + $0x3f0] sm:$0xff]  ;;  %v904_v60 = vpack.c.bf16 %v112_v52, %v111_v51 }
  0x37   :  { %929 = vmatpush3.bf16.msra.mxu1 %v928_v37  ;;  %v162_v59 = vld [vmem:[%s1480_s1 + $0x3f8] sm:$0xff]  ;;  %v936_v61 = vpack.c.bf16 %v144_v55, %v143_v53  ;;  %v906_v62 = vpack.c.bf16 %v130_v57, %v129_v56  ;;  %v113_v63 = vld [vmem:[%s1480_s1 + $0x270] sm:$0xff]  ;;  %v31_v6 = vld [vmem:[%s1479_s0 + $0x20] sm:$0xff] }
  0x38   :  { %931 = vmatprep.subr.bf16.mxu1 %v930_v42  ;;  %v114_v0 = vld [vmem:[%s1480_s1 + $0x278] sm:$0xff]  ;;  %v938_v1 = vpack.c.bf16 %v162_v59, %v161_v58  ;;  %v145_v2 = vld [vmem:[%s1480_s1 + $0x370] sm:$0xff]  ;;  %v451_v8 = vld [vmem:[%s1482_s3] sm:$0xff] }
  0x39   :  { %901 = vmatpush3.bf16.msra.mxu0 %v900_v48  ;;  %v146_v3 = vld [vmem:[%s1480_s1 + $0x378] sm:$0xff]  ;;  %v908_v4 = vpack.c.bf16 %v114_v0, %v113_v63  ;;  %v33_v7 = vld [vmem:[%s1479_s0 + $0x30] sm:$0xff]  ;;  %v452_v9 = vld [vmem:[%s1482_s3 + $0x8] sm:$0xff] }
  0x3a   :  { %903 = vmatprep.subr.bf16.mxu0 %v902_v50  ;;  %v940_v5 = vpack.c.bf16 %v146_v3, %v145_v2  ;;  %v943_v10 = vpack.c.bf16 %v452_v9, %v451_v8  ;;  %v453_v12 = vld [vmem:[%s1482_s3 + $0x10] sm:$0xff]  ;;  %v454_v13 = vld [vmem:[%s1482_s3 + $0x18] sm:$0xff]  ;;  %v537_v16 = vld [vmem:[%s1484_s5] sm:$0xff] }
  0x3b   :  { %933 = vmatpush3.bf16.msra.mxu1 %v932_v49  ;;  %v946_v14 = vpack.c.bf16 %v454_v13, %v453_v12  ;;  %v538_v17 = vld [vmem:[%s1484_s5 + $0x8] sm:$0xff]  ;;  %v637_v20 = vld [vmem:[%s1481_s2] ss:$0 sm:$0xff]  ;;  %v539_v37 = vld [vmem:[%s1484_s5 + $0x10] sm:$0xff] }
  0x3c   :  { %935 = vmatprep.subr.bf16.mxu1 %v934_v54  ;;  %v949_v18 = vpack.c.bf16 %v538_v17, %v537_v16  ;;  %v540_v38 = vld [vmem:[%s1484_s5 + $0x18] sm:$0xff]  ;;  %v638_v40 = vld [vmem:[%s1483_s4] ss:$0 sm:$0xff]  ;;  %s958_s5 = scalar_lea.vmem %s630_s16, 128 }
  0x3d   :  { %905 = vmatpush3.bf16.msra.mxu0 %v904_v60  ;;  %v952_v39 = vpack.c.bf16 %v540_v38, %v539_v37  ;;  %v640_v45 = vld [vmem:[%s1485_s6] ss:$0 sm:$0xff]  ;;  %p959_p0 = scmp.ne.s32.totalorder %s630_s16, %s958_s5  ;;  %p964_p2 = scmp.lt.s32.totalorder %s958_s5, %s958_s5 }
  0x3e   :  { %907 = vmatprep.subr.bf16.mxu0 %v906_v62 }
  0x3f   :  { %937 = vmatpush3.bf16.msra.mxu1 %v936_v61  ;;  %p965_p3 = por %p964_p2, %p963_p1 }
  0x40   :  { %939 = vmatprep.subr.bf16.mxu1 %v938_v1 }
  0x41   :  { %909 = vmatpush3.bf16.msra.mxu0 %v908_v4  ;;  %p966_p4 = pnand %p965_p3, %p959_p0 }
  0x42   :  { %942 = vmatprep.subr.bf16.mxu0 %v982_v11 }
  0x43   :  { %941 = vmatpush3.bf16.msra.mxu1 %v940_v5 }
  0x44   :  { %375 = vmatmul.mubr.f32.vlgmr.msra.gmra.mrb[2].mxu0 %v31_v6  ;;  %948 = vmatprep.subr.bf16.mxu1 %v982_v11 }
  0x45   :  { %944 = vmatpush3.bf16.msra.mxu0 %v943_v10  ;;  %800 = vmatprep.mubr.msk.f32.mxu0 %vm983_vm0, %v984_v15 }
  0x46   :  { %445 = vmatmul.mubr.f32.vlgmr.msra.gmra.mrb[2].mxu1 %v33_v7  ;;  %945 = vmatprep.subr.bf16.mxu0 %v982_v11 }
  0x47   :  { %811 = vmatprep.mubr.msk.f32.mxu1 %vm983_vm0, %v984_v15  ;;  %950 = vmatpush3.bf16.msra.mxu1 %v949_v18 }
  0x48   :  { %951 = vmatprep.subr.bf16.mxu1 %v982_v11 }
  0x49   :  { %947 = vmatpush3.bf16.msra.mxu0 %v946_v14 }
  0x4b   :  { %953 = vmatpush3.bf16.msra.mxu1 %v952_v39 }
  0xf7   :  { %v674_v19 = vpop.f32.mrb[0].mxu0 }
  0xf8   :  { %v675_v21 = vpop.f32.mrb[1].mxu0 }
  0xf9   :  { %v709_v22 = vpop.f32.mrb[0].mxu1  ;;  %v676_v23 = vadd.f32 %v675_v21, %v674_v19 }
  0xfa   :  { %v710_v24 = vpop.f32.mrb[1].mxu1 }
  0xfb   :  { %v711_v25 = vadd.f32 %v710_v24, %v709_v22  ;;  %v237_v26 = vadd.f32 %v676_v23, %v637_v20 }
  0xfd   :  { %v307_v27 = vadd.f32 %v711_v25, %v237_v26 }
 0x117   :  { %v744_v28 = vpop.f32.mrb[2].mxu0 }
 0x118   :  { %v745_v29 = vpop.f32.mrb[3].mxu0 }
 0x119   :  { %v779_v30 = vpop.f32.mrb[2].mxu1  ;;  %v746_v31 = vadd.f32 %v745_v29, %v744_v28 }
 0x11a   :  { %v780_v32 = vpop.f32.mrb[3].mxu1 }
 0x11b   :  { %v781_v33 = vadd.f32 %v780_v32, %v779_v30  ;;  %v377_v34 = vadd.f32 %v746_v31, %v307_v27 }
 0x11d   :  { %v447_v35 = vadd.f32 %v781_v33, %v377_v34 }
 0x11f   :  { %v450_v36 = vmax.f32 %v447_v35, 0.0 }
 0x121   :  { %801 = vmatmul.mubr.msk.f32.vlgmr.msra.gmra.mrb[4].mxu0 %vm462_vm1, %v450_v36 }
 0x1f4   :  { %v532_v41 = vpop.f32.mrb[4].mxu0 }
 0x1f5   :  { %v533_v42 = vadd.f32 %v638_v40, %v532_v41  ;;  %v802_v43 = vpop.f32.mrb[5].mxu0 }
 0x1f7   :  { %v536_v44 = vmax.f32 %v533_v42, 0.0 }
 0x1f9   :  { %812 = vmatmul.mubr.msk.f32.vlgmr.msra.gmra.mrb[4].mxu1 %vm462_vm1, %v536_v44 }
 0x2cc   :  { %v617_v46 = vpop.f32.mrb[4].mxu1 }
 0x2cd   :  { %v618_v47 = vadd.f32 %v640_v45, %v617_v46  ;;  %v813_v48 = vpop.f32.mrb[5].mxu1 }
 0x2cf   :  { %622 = vst.msk [vmem:[#allocation2] sm:$0xff] %vm621_vm2, %v618_v47 }
 0x2d0   :  { %969 = shalt.err (!%p966_p4)
}
 0x2d1   :  { %s970_s18 = scalar_lea.hbm %s1486_s7, 128 }
 0x2d2   :  { %p971_p5 = scmp.ne.s32.totalorder %s1486_s7, %s970_s18  ;;  %p974_p6 = scmp.lt.u32.totalorder %s970_s18, %s1486_s7 }
 0x2d4   :  { %p976_p7 = pnand %p974_p6, %p971_p5 }
 0x2d6   :  { %979 = shalt.err (!%p976_p7)
}
 0x2d7   :  { %632 = dma.vmem_to_hbm [thread:$0]  %s630_s16, 128, %s1486_s7, [#allocation3]  }
 0x2d8   :  { %980 = dma.done.wait [#allocation3], 128  }
 0x2d9   :  { %981 = vsyncadd [#allocation3], 4294967168 }
 0x2da   :  { %636 = vsyncpa [#allocation3], 1 }

</bundles_post_ra>
